<compile_context>
chip_gen: v6e
topology: v6e:2x2x1
jax: 0.10.0
libtpu: 0.0.40
codegen_flags: <defaults>
</compile_context>

<pallas_src>
import math

import jax
import jax.numpy as jnp
from jax.experimental import pallas as pl
from jax.experimental.pallas import tpu as pltpu


def _round_up(x: int, m: int) -> int:
    return ((x + m - 1) // m) * m


def _linear_kernel(x_ref, w_ref, b_ref, o_ref, acc_ref):
    """One (tm, tn) output tile of  out = x @ w + b, accumulated over K.

    x_ref:   (tm, tk)   compute dtype
    w_ref:   (tk, tn)   compute dtype
    b_ref:   (1,  tn)   float32
    o_ref:   (tm, tn)   output dtype
    acc_ref: (tm, tn)   float32 scratch, persistent across the K grid axis
    """
    @pl.when(pl.program_id(2) == 0)
    def _():
        acc_ref[...] = jnp.zeros_like(acc_ref)

    acc_ref[...] += jnp.dot(x_ref[...], w_ref[...],
                            preferred_element_type=jnp.float32)

    @pl.when(pl.program_id(2) == pl.num_programs(2) - 1)
    def _():
        # f32 epilogue (bias add + cast) -- safe on v5e's non-bf16 VPU too.
        o_ref[...] = (acc_ref[...] + b_ref[...]).astype(o_ref.dtype)


def static_projection_forward(feat, weight, bias, *,
                              tm=256, tn=256, tk=512,
                              compute_dtype=None):
    """Pallas equivalent of StaticProjectionLayer.forward.

    feat:   (..., C)       e.g. (S, B, C) in fairseq
    weight: (C, E)         torch's Linear weight (E, C), pre-transposed
    bias:   (E,)
    Returns (..., E) in feat.dtype.
    """
    lead = feat.shape[:-1]
    C = feat.shape[-1]
    Cw, E = weight.shape
    assert Cw == C, f"weight C dim {Cw} != feat C dim {C}"
    M = int(math.prod(lead)) if lead else 1

    out_dtype = feat.dtype
    cdt = compute_dtype if compute_dtype is not None else feat.dtype

    # ---- tile selection -------------------------------------------------
    # Row tile: multiple of 8 (f32 sublane); cap at the (padded) row count.
    tm_eff = min(tm, _round_up(M, 8))
    Mp = _round_up(M, tm_eff)

    # Output columns: lane-dense (multiple of 128). Pad E up; slice later.
    tn_eff = min(tn, _round_up(E, 128))
    Ep = _round_up(E, tn_eff)

    # Reduction dim: single K step if C fits in one tile (block == full dim,
    # so no 128-divisibility requirement); otherwise tile with 128-multiples.
    if C <= tk:
        tk_eff, Cp = C, C
    else:
        tk_eff = tk
        Cp = _round_up(C, tk_eff)

    # ---- pad operands (zeros are mathematically inert) ------------------
    x = feat.reshape(M, C)
    xp = jnp.pad(x, ((0, Mp - M), (0, Cp - C)))
    wp = jnp.pad(weight, ((0, Cp - C), (0, Ep - E)))
    bp = jnp.pad(bias.astype(jnp.float32), (0, Ep - E)).reshape(1, Ep)

    xp = xp.astype(cdt)
    wp = wp.astype(cdt)

    grid = (Mp // tm_eff, Ep // tn_eff, Cp // tk_eff)

    # ---- VMEM budget (double-buffered inputs + output + acc scratch) ----
    in_bytes = jnp.dtype(cdt).itemsize
    est = (2 * (tm_eff * tk_eff + tk_eff * tn_eff + tn_eff) * in_bytes
           + 2 * tm_eff * tn_eff * jnp.dtype(out_dtype).itemsize
           + tm_eff * tn_eff * 4)
    vmem_limit = int(min(48 * 1024 * 1024, max(4 * est, 4 * 1024 * 1024)))

    out_padded = pl.pallas_call(
        _linear_kernel,
        out_shape=jax.ShapeDtypeStruct((Mp, Ep), out_dtype),
        grid_spec=pltpu.PrefetchScalarGridSpec(
            num_scalar_prefetch=0,
            grid=grid,
            in_specs=[
                pl.BlockSpec((tm_eff, tk_eff), lambda i, j, k: (i, k)),
                pl.BlockSpec((tk_eff, tn_eff), lambda i, j, k: (k, j)),
                pl.BlockSpec((1, tn_eff), lambda i, j, k: (0, j)),
            ],
            out_specs=pl.BlockSpec((tm_eff, tn_eff), lambda i, j, k: (i, j)),
            scratch_shapes=[pltpu.VMEM((tm_eff, tn_eff), jnp.float32)],
        ),
        compiler_params=pltpu.CompilerParams(
            dimension_semantics=("parallel", "parallel", "arbitrary"),
            vmem_limit_bytes=vmem_limit,
        ),
    )(xp, wp, bp)

    return out_padded[:M, :E].reshape(*lead, E)


def _reference(feat, weight, bias):
    return jnp.einsum('...c,ce->...e', feat, weight) + bias


if __name__ == "__main__":
    key = jax.random.PRNGKey(0)
    k1, k2, k3, k4, k5, k6 = jax.random.split(key, 6)

    # ---- main test: small fairseq-style shapes (S, B, C) ----------------
    S, B = 8, 4
    feat_channel, embed_dim = 32, 32
    bound = 1.0 / math.sqrt(feat_channel)
    # torch Linear weight is (E, C); store transposed (C, E) for x @ W.
    weight = jax.random.uniform(k1, (feat_channel, embed_dim),
                                minval=-bound, maxval=bound, dtype=jnp.float32)
    bias = jax.random.uniform(k2, (embed_dim,),
                              minval=-bound, maxval=bound, dtype=jnp.float32)
    feat = jax.random.normal(k3, (S, B, feat_channel), dtype=jnp.float32)

    out = static_projection_forward(feat, weight, bias)
    out = jax.block_until_ready(out)

    ref = _reference(feat, weight, bias)
    assert out.shape == (S, B, embed_dim)
    assert jnp.allclose(out, ref, atol=1e-5, rtol=1e-5), "mismatch vs reference"

    # ---- second test: non-aligned dims to exercise the padding paths ----
    C2, E2 = 40, 72
    w2 = jax.random.uniform(k4, (C2, E2), minval=-0.1, maxval=0.1,
                            dtype=jnp.float32)
    b2 = jax.random.uniform(k5, (E2,), minval=-0.1, maxval=0.1,
                            dtype=jnp.float32)
    f2 = jax.random.normal(k6, (5, 3, C2), dtype=jnp.float32)
    o2 = jax.block_until_ready(static_projection_forward(f2, w2, b2))
    assert o2.shape == (5, 3, E2)
    assert jnp.allclose(o2, _reference(f2, w2, b2), atol=1e-5, rtol=1e-5), \
        "mismatch vs reference (padded case)"

    print("KERNEL_OK")
</pallas_src>

<mosaic_0001>
module attributes {stable_mosaic.version = 11 : i64} {
  func.func @_linear_kernel(%arg0: i32, %arg1: i32, %arg2: i32, %arg3: memref<32x32xf32, #tpu.memory_space<vmem>>, %arg4: memref<32x128xf32, #tpu.memory_space<vmem>>, %arg5: memref<1x128xf32, #tpu.memory_space<vmem>>, %arg6: memref<32x128xf32, #tpu.memory_space<vmem>>, %arg7: memref<32x128xf32, #tpu.memory_space<vmem>>) attributes {dimension_semantics = [#tpu.dimension_semantics<parallel>, #tpu.dimension_semantics<parallel>, #tpu.dimension_semantics<arbitrary>], iteration_bounds = array<i64: 1, 1, 1>, scalar_prefetch = 0 : i64, scratch_operands = 1 : i64, tpu.core_type = #tpu.core_type<tc>, window_params = [{transform_indices = @transform_0, window_bounds = array<i64: 32, 32>}, {transform_indices = @transform_1, window_bounds = array<i64: 32, 128>}, {transform_indices = @transform_2, window_bounds = array<i64: 1, 128>}, {transform_indices = @transform_3, window_bounds = array<i64: 32, 128>}]} {
    %c0_i32 = arith.constant 0 : i32
    %0 = arith.cmpi eq, %arg2, %c0_i32 : i32
    %1 = arith.extui %0 : i1 to i32
    %c0_i32_0 = arith.constant 0 : i32
    %2 = arith.cmpi ne, %1, %c0_i32_0 : i32
    scf.if %2 {
      %cst_10 = arith.constant 0.000000e+00 : f32
      %12 = vector.broadcast %cst_10 : f32 to vector<32x128xf32>
      %c0_11 = arith.constant 0 : index
      %c0_12 = arith.constant 0 : index
      %13 = vector.load %arg7[%c0_11, %c0_12] : memref<32x128xf32, #tpu.memory_space<vmem>>, vector<32x128xf32>
      tpu.vector_store %arg7[%c0_11, %c0_12], %12 {strides = array<i32>} : memref<32x128xf32, #tpu.memory_space<vmem>>, vector<32x128xf32>,
    } else {
    }
    %c0 = arith.constant 0 : index
    %c0_1 = arith.constant 0 : index
    %3 = vector.load %arg7[%c0, %c0_1] : memref<32x128xf32, #tpu.memory_space<vmem>>, vector<32x128xf32>
    %c0_2 = arith.constant 0 : index
    %c0_3 = arith.constant 0 : index
    %4 = vector.load %arg3[%c0_2, %c0_3] : memref<32x32xf32, #tpu.memory_space<vmem>>, vector<32x32xf32>
    %c0_4 = arith.constant 0 : index
    %c0_5 = arith.constant 0 : index
    %5 = vector.load %arg4[%c0_4, %c0_5] : memref<32x128xf32, #tpu.memory_space<vmem>>, vector<32x128xf32>
    %cst = arith.constant dense<0.000000e+00> : vector<32x128xf32>
    %6 = tpu.matmul %4, %5, %cst {dimension_numbers = #tpu.dot_dimension_numbers<[1], [0], [0], [1], [0, 0, 1, 1], [], []>} : vector<32x32xf32>, vector<32x128xf32>, vector<32x128xf32> -> vector<32x128xf32>
    %7 = arith.addf %3, %6 : vector<32x128xf32>
    %c0_6 = arith.constant 0 : index
    %c0_7 = arith.constant 0 : index
    %8 = vector.load %arg7[%c0_6, %c0_7] : memref<32x128xf32, #tpu.memory_space<vmem>>, vector<32x128xf32>
    tpu.vector_store %arg7[%c0_6, %c0_7], %7 {strides = array<i32>} : memref<32x128xf32, #tpu.memory_space<vmem>>, vector<32x128xf32>,
    %c0_i32_8 = arith.constant 0 : i32
    %9 = arith.cmpi eq, %arg2, %c0_i32_8 : i32
    %10 = arith.extui %9 : i1 to i32
    %c0_i32_9 = arith.constant 0 : i32
    %11 = arith.cmpi ne, %10, %c0_i32_9 : i32
    scf.if %11 {
      %c0_10 = arith.constant 0 : index
      %c0_11 = arith.constant 0 : index
      %12 = vector.load %arg7[%c0_10, %c0_11] : memref<32x128xf32, #tpu.memory_space<vmem>>, vector<32x128xf32>
      %c0_12 = arith.constant 0 : index
      %c0_13 = arith.constant 0 : index
      %13 = vector.load %arg5[%c0_12, %c0_13] : memref<1x128xf32, #tpu.memory_space<vmem>>, vector<1x128xf32>
      %14 = vector.broadcast %13 : vector<1x128xf32> to vector<32x128xf32>
      %15 = arith.addf %12, %14 : vector<32x128xf32>
      %c0_14 = arith.constant 0 : index
      %c0_15 = arith.constant 0 : index
      %16 = vector.load %arg6[%c0_14, %c0_15] : memref<32x128xf32, #tpu.memory_space<vmem>>, vector<32x128xf32>
      tpu.vector_store %arg6[%c0_14, %c0_15], %15 {strides = array<i32>} : memref<32x128xf32, #tpu.memory_space<vmem>>, vector<32x128xf32>,
    } else {
    }
    return
  }
  func.func @transform_0(%arg0: i32, %arg1: i32, %arg2: i32) -> (i32, i32) {
    %c0_i32 = arith.constant 0 : i32
    return %arg0, %arg2 : i32, i32
  }
  func.func @transform_1(%arg0: i32, %arg1: i32, %arg2: i32) -> (i32, i32) {
    %c0_i32 = arith.constant 0 : i32
    return %arg2, %arg1 : i32, i32
  }
  func.func @transform_2(%arg0: i32, %arg1: i32, %arg2: i32) -> (i32, i32) {
    %c0_i32 = arith.constant 0 : i32
    %c0_i32_0 = arith.constant 0 : i32
    return %c0_i32, %arg1 : i32, i32
  }
  func.func @transform_3(%arg0: i32, %arg1: i32, %arg2: i32) -> (i32, i32) {
    %c0_i32 = arith.constant 0 : i32
    return %arg0, %arg1 : i32, i32
  }
}

</mosaic_0001>

<bundles_post_ra>
// kernel: tpu_custom_call.1
= control target key start
LH: loop header
LB: loop body
LE: loop exit
PB: predicated region body
PF: predicated region fallthrough
CT: control target
= control target key end

     0   :  { %8 = vsyncpa [#allocation4], 0  ;;  %s361_s0 = inlined_call_operand.hbm [shape: f32[32,32], index: 0, kind: input, shape index: {}]   ;;  %s362_s1 = inlined_call_operand.hbm [shape: f32[32,128], index: 1, kind: input, shape index: {}]   ;;  %s363_s2 = inlined_call_operand.vmem [shape: f32[1,128], index: 2, kind: input, shape index: {}]   ;;  %s364_s3 = inlined_call_operand.hbm [shape: f32[32,128], index: 3, kind: output, shape index: {}]  }
   0x1   :  { %9 = vsyncpa [#allocation7], 0 }
   0x2   :  { %10 = vsyncpa [#allocation5], 0  ;;  %s315_s12 = smov [#allocation3]  }
   0x3   :  { %s16_s13 = sshll.u32 %s315_s12, 4  ;;  %s17_s13 = int_to_ptr.vmem [resolvable:$true] %s16_s13 }
   0x4   :  { %s257_s14 = scalar_lea.vmem %s17_s13, 512  ;;  %p262_p1 = scmp.lt.s32.totalorder %s17_s13, %s17_s13 }
   0x5   :  { %p258_p0 = scmp.ne.s32.totalorder %s17_s13, %s257_s14  ;;  %p263_p2 = scmp.lt.s32.totalorder %s257_s14, %s257_s14 }
   0x7   :  { %p264_p3 = por %p263_p2, %p262_p1 }
   0x9   :  { %p265_p4 = pnand %p264_p3, %p258_p0 }
   0xb   :  { %268 = shalt.err (!%p265_p4)
}
   0xc   :  { %s316_s15 = smov 128   ;;  %s317_s16 = smov 8  }
   0xd   :  { %22 = dma.hbm_to_vmem [thread:$0]  %s361_s0, 512, %s17_s13, [#allocation4], %s316_s15, %s316_s15, %s317_s16  }
   0xe   :  { %s318_s19 = smov [#allocation6]  }
   0xf   :  { %s28_s20 = sshll.u32 %s318_s19, 4  ;;  %s29_s20 = int_to_ptr.vmem [resolvable:$true] %s28_s20 }
  0x10   :  { %s277_s21 = scalar_lea.vmem %s29_s20, 512  ;;  %p282_p6 = scmp.lt.s32.totalorder %s29_s20, %s29_s20 }
  0x11   :  { %p278_p5 = scmp.ne.s32.totalorder %s29_s20, %s277_s21  ;;  %p283_p7 = scmp.lt.s32.totalorder %s277_s21, %s277_s21 }
  0x13   :  { %p284_p8 = por %p283_p7, %p282_p6 }
  0x15   :  { %p285_p9 = pnand %p284_p8, %p278_p5 }
  0x17   :  { %288 = shalt.err (!%p285_p9)
}
  0x18   :  { %34 = dma.hbm_to_vmem [thread:$0]  %s362_s1, 512, %s29_s20, [#allocation7], %s316_s15, %s316_s15, %s317_s16  }
  0x19   :  { %309 = dma.done.wait [#allocation4], 512  }
  0x1a   :  { %310 = vsyncadd [#allocation4], 4294966784 }
  0x1b   :  { %311 = dma.done.wait [#allocation7], 512  }
  0x1c   :  { %312 = vsyncadd [#allocation7], 4294966784  ;;  %v62_v0 = vld [vmem:[#allocation6 + $0x18] sm:$0xff]  ;;  %v61_v1 = vld [vmem:[#allocation6 + $0x10] sm:$0xff]  ;;  %vm63_vm0 = vcmask 261120   ;;  %s319_s24 = smov [#allocation8]  }
  0x1d   :  { %222 = vmatprep.subr.mxu0 %v62_v0  ;;  %236 = vmatprep.subr.mxu1 %v62_v0  ;;  %v60_v2 = vld [vmem:[#allocation6 + $0x8] sm:$0xff]  ;;  %v59_v3 = vld [vmem:[#allocation6] sm:$0xff]  ;;  %v57_v5 = vld [vmem:[#allocation3 + $0x10] sm:$0xff]  ;;  %s196_s25 = sshll.u32 %s319_s24, 4  ;;  %s197_s25 = int_to_ptr.vmem [resolvable:$true] %s196_s25 }
  0x1e   :  { %223 = vmatpush3.msra.mxu0 %v62_v0  ;;  %240 = vmatpush3.msra.mxu1 %v62_v0  ;;  %v55_v4 = vld [vmem:[#allocation3] sm:$0xff]  ;;  %v56_v6 = vld [vmem:[#allocation3 + $0x8] sm:$0xff]  ;;  %v58_v7 = vld [vmem:[#allocation3 + $0x18] sm:$0xff]  ;;  %s289_s26 = scalar_lea.vmem %s197_s25, 512  ;;  %p294_p11 = scmp.lt.s32.totalorder %s197_s25, %s197_s25 }
  0x1f   :  { %224 = vmatprep.subr.mxu0 %v61_v1  ;;  %237 = vmatprep.subr.mxu1 %v61_v1  ;;  %v213_v8 = vld [vmem:[%s363_s2] ss:$0 sm:$0xff]  ;;  %p290_p10 = scmp.ne.s32.totalorder %s197_s25, %s289_s26  ;;  %p295_p12 = scmp.lt.s32.totalorder %s289_s26, %s289_s26 }
  0x20   :  { %225 = vmatpush3.msra.mxu0 %v61_v1  ;;  %241 = vmatpush3.msra.mxu1 %v61_v1 }
  0x21   :  { %226 = vmatprep.subr.mxu0 %v60_v2  ;;  %238 = vmatprep.subr.mxu1 %v60_v2  ;;  %p296_p13 = por %p295_p12, %p294_p11 }
  0x22   :  { %227 = vmatpush3.msra.mxu0 %v60_v2  ;;  %242 = vmatpush3.msra.mxu1 %v60_v2 }
  0x23   :  { %228 = vmatprep.subr.mxu0 %v59_v3  ;;  %239 = vmatprep.subr.mxu1 %v59_v3  ;;  %p297_p0 = pnand %p296_p13, %p290_p10 }
  0x24   :  { %229 = vmatpush3.msra.mxu0 %v59_v3  ;;  %243 = vmatpush3.msra.mxu1 %v59_v3 }
  0x25   :  { %230 = vmatprep.mubr.msk.f32.mxu0 %vm63_vm0, %v55_v4  ;;  %233 = vmatprep.mubr.msk.f32.mxu1 %vm63_vm0, %v57_v5 }
  0x26   :  { %231 = vmatmul.mubr.msk.f32.vlgmr.msra.gmra.mxu0 %vm63_vm0, %v56_v6  ;;  %234 = vmatmul.mubr.msk.f32.vlgmr.msra.gmra.mxu1 %vm63_vm0, %v58_v7 }
  0xe6   :  { %v232_v9 = vpop.f32.mrf.mxu0  ;;  %v235_v10 = vpop.f32.mrf.mxu1 }
  0xe7   :  { %v184_v11 = vadd.f32 %v232_v9, %v213_v8  ;;  %v186_v12 = vadd.f32 %v235_v10, %v213_v8 }
  0xe8   :  { %v142_v13 = vpop.f32.mrf.mxu0  ;;  %v152_v14 = vpop.f32.mrf.mxu1 }
  0xe9   :  { %188 = vst [vmem:[#allocation8 + $0x8] sm:$0xff] %v184_v11  ;;  %190 = vst [vmem:[#allocation8 + $0x18] sm:$0xff] %v186_v12  ;;  %v183_v15 = vadd.f32 %v213_v8, %v142_v13  ;;  %v185_v16 = vadd.f32 %v213_v8, %v152_v14 }
  0xeb   :  { %187 = vst [vmem:[#allocation8] sm:$0xff] %v183_v15  ;;  %189 = vst [vmem:[#allocation8 + $0x10] sm:$0xff] %v185_v16 }
  0xec   :  { %300 = shalt.err (!%p297_p0)
}
  0xed   :  { %202 = dma.vmem_to_hbm [thread:$0]  %s197_s25, 512, %s364_s3, [#allocation5], %s316_s15, %s316_s15, %s317_s16  }
  0xee   :  { %313 = dma.done.wait [#allocation5], 512  }
  0xef   :  { %314 = vsyncadd [#allocation5], 4294966784 }
  0xf0   :  { %206 = vsyncpa [#allocation4], 1 }
  0xf1   :  { %207 = vsyncpa [#allocation7], 1 }
  0xf2   :  { %208 = vsyncpa [#allocation5], 1 }

</bundles_post_ra>
